<compile_context>
chip_gen: v7x
topology: tpu7x:2x2x1
jax: 0.10.0
libtpu: 0.0.40
codegen_flags: <defaults>
</compile_context>

<pallas_src>
import jax
import jax.numpy as jnp
from jax.experimental import pallas as pl
from jax.experimental.pallas import tpu as pltpu


def _add_pos_kernel(q_ref, pos_ref, out_ref):
    # q_ref / out_ref: (TB, TR, lanes);  pos_ref: (1, TR, lanes) shared table.
    # Pure VPU broadcast-add; no MXU, no transposes, no temporaries.
    out_ref[...] = q_ref[...] + pos_ref[...]


def prepare_pos_table(pos_weight, dtype=jnp.float32):
    """One-time layout plumbing: (max_len, d_model) -> dense (1, rows, lanes).

    Hoisted out of the forward so the transpose is paid once, not per call.
    """
    max_len, d_model = pos_weight.shape
    df = d_model * max_len
    pos_t = jnp.transpose(pos_weight).astype(dtype)  # (d_model, max_len)
    if df % 128 == 0:
        return pos_t.reshape(1, df // 128, 128)      # sublane/lane-dense
    return pos_t.reshape(1, 1, df)                   # fallback (masked stores)


def learn_positional_encoding(q, pos_table, *, tile_budget_bytes=2 << 20):
    """q: (B, d_model, q_frm); pos_table: output of prepare_pos_table.

    Returns q + pos_embed.weight.T[None]; same shape/dtype as q
    (dropout = identity in eval mode).
    """
    B, D, F = q.shape
    rows, lanes = pos_table.shape[1], pos_table.shape[2]
    assert rows * lanes == D * F, (
        "pos table does not match q: ", (rows, lanes), (D, F))

    itemsize = jnp.dtype(q.dtype).itemsize
    row_bytes = lanes * itemsize

    # Row tile: whole slab if it fits the budget, else a multiple-of-8 chunk.
    if rows * row_bytes <= tile_budget_bytes:
        tr = rows
    else:
        tr = max(8, (tile_budget_bytes // (row_bytes * 8)) * 8)
        tr = min(tr, rows)

    # Batch tile: fold as many batch elements as fit the budget.
    per_batch_step_bytes = tr * row_bytes
    tb = max(1, min(B, tile_budget_bytes // max(per_batch_step_bytes, 1)))

    grid = (pl.cdiv(B, tb), pl.cdiv(rows, tr))

    q_resh = q.reshape(B, rows, lanes)  # contiguous reshape: metadata only

    # VMEM budget: double-buffered q-in + out + pos table (+ headroom).
    q_block_bytes = tb * tr * row_bytes
    pos_block_bytes = tr * row_bytes
    vmem_needed = 2 * 2 * q_block_bytes + 2 * pos_block_bytes
    vmem_limit = int(min(64 << 20, max(16 << 20, 2 * vmem_needed + (2 << 20))))

    total_elems = B * rows * lanes
    cost = pl.CostEstimate(
        flops=total_elems,
        transcendentals=0,
        bytes_accessed=(2 * total_elems + rows * lanes) * itemsize,
    )

    out = pl.pallas_call(
        _add_pos_kernel,
        out_shape=jax.ShapeDtypeStruct((B, rows, lanes), q.dtype),
        grid_spec=pltpu.PrefetchScalarGridSpec(
            num_scalar_prefetch=0,
            grid=grid,
            in_specs=[
                pl.BlockSpec((tb, tr, lanes), lambda b, r: (b, r, 0)),  # q
                pl.BlockSpec((1, tr, lanes), lambda b, r: (0, r, 0)),   # table
            ],
            out_specs=pl.BlockSpec((tb, tr, lanes), lambda b, r: (b, r, 0)),
        ),
        compiler_params=pltpu.CompilerParams(
            dimension_semantics=("parallel", "parallel"),
            vmem_limit_bytes=vmem_limit,
        ),
        cost_estimate=cost,
    )(q_resh, pos_table)

    return out.reshape(B, D, F)


def _reference(q, pos_weight):
    """Pure-JAX reference mirroring the PyTorch forward (eval mode)."""
    return q + jnp.transpose(pos_weight)[None, :, :].astype(q.dtype)


if __name__ == "__main__":
    key = jax.random.PRNGKey(0)
    kq, kw = jax.random.split(key, 2)

    # Shapes implied by the module: q is (batch, d_model, frames) with
    # frames == max_len (the module asserts it).
    B, d_model, max_len = 2, 32, 64

    q = jax.random.normal(kq, (B, d_model, max_len), dtype=jnp.float32)
    # nn.init.uniform_ default range is [0, 1)
    pos_w = jax.random.uniform(kw, (max_len, d_model),
                               minval=0.0, maxval=1.0, dtype=jnp.float32)

    # Module-level assertion: q_frm == max_len.
    assert max_len == pos_w.shape[0], (max_len, pos_w.shape)

    # Hoisted, one-time table preparation (layout plumbing outside the forward).
    pos_table = prepare_pos_table(pos_w, dtype=q.dtype)

    out = learn_positional_encoding(q, pos_table)
    out = jax.block_until_ready(out)

    ref = _reference(q, pos_w)
    assert out.shape == (B, d_model, max_len)
    assert out.dtype == q.dtype
    assert jnp.allclose(out, ref, atol=1e-6, rtol=1e-6), "mismatch vs reference"

    print("KERNEL_OK")
</pallas_src>

<mosaic_0001>
module attributes {stable_mosaic.version = 11 : i64} {
  func.func @_add_pos_kernel(%arg0: i32, %arg1: i32, %arg2: memref<2x16x128xf32, #tpu.memory_space<vmem>>, %arg3: memref<1x16x128xf32, #tpu.memory_space<vmem>>, %arg4: memref<2x16x128xf32, #tpu.memory_space<vmem>>) attributes {dimension_semantics = [#tpu.dimension_semantics<parallel>, #tpu.dimension_semantics<parallel>], iteration_bounds = array<i64: 1, 1>, scalar_prefetch = 0 : i64, scratch_operands = 0 : i64, tpu.core_type = #tpu.core_type<tc>, window_params = [{transform_indices = @transform_0, window_bounds = array<i64: 2, 16, 128>}, {transform_indices = @transform_1, window_bounds = array<i64: 1, 16, 128>}, {transform_indices = @transform_2, window_bounds = array<i64: 2, 16, 128>}]} {
    %c0 = arith.constant 0 : index
    %c0_0 = arith.constant 0 : index
    %c0_1 = arith.constant 0 : index
    %0 = vector.load %arg2[%c0, %c0_0, %c0_1] : memref<2x16x128xf32, #tpu.memory_space<vmem>>, vector<2x16x128xf32>
    %c0_2 = arith.constant 0 : index
    %c0_3 = arith.constant 0 : index
    %c0_4 = arith.constant 0 : index
    %1 = vector.load %arg3[%c0_2, %c0_3, %c0_4] : memref<1x16x128xf32, #tpu.memory_space<vmem>>, vector<1x16x128xf32>
    %2 = vector.broadcast %1 : vector<1x16x128xf32> to vector<2x16x128xf32>
    %3 = arith.addf %0, %2 : vector<2x16x128xf32>
    %c0_5 = arith.constant 0 : index
    %c0_6 = arith.constant 0 : index
    %c0_7 = arith.constant 0 : index
    %4 = vector.load %arg4[%c0_5, %c0_6, %c0_7] : memref<2x16x128xf32, #tpu.memory_space<vmem>>, vector<2x16x128xf32>
    tpu.vector_store %arg4[%c0_5, %c0_6, %c0_7], %3 {strides = array<i32>} : memref<2x16x128xf32, #tpu.memory_space<vmem>>, vector<2x16x128xf32>,
    return
  }
  func.func @transform_0(%arg0: i32, %arg1: i32) -> (i32, i32, i32) {
    %c0_i32 = arith.constant 0 : i32
    %c0_i32_0 = arith.constant 0 : i32
    return %arg0, %arg1, %c0_i32 : i32, i32, i32
  }
  func.func @transform_1(%arg0: i32, %arg1: i32) -> (i32, i32, i32) {
    %c0_i32 = arith.constant 0 : i32
    %c0_i32_0 = arith.constant 0 : i32
    %c0_i32_1 = arith.constant 0 : i32
    return %c0_i32, %arg1, %c0_i32_0 : i32, i32, i32
  }
  func.func @transform_2(%arg0: i32, %arg1: i32) -> (i32, i32, i32) {
    %c0_i32 = arith.constant 0 : i32
    %c0_i32_0 = arith.constant 0 : i32
    return %arg0, %arg1, %c0_i32 : i32, i32, i32
  }
}

</mosaic_0001>

<bundles_post_ra>
// kernel: tpu_custom_call.1
= control target key start
LH: loop header
LB: loop body
LE: loop exit
PB: predicated region body
PF: predicated region fallthrough
CT: control target
= control target key end

     0   :  { %7 = vsyncpa [#allocation3], 0  ;;  %s214_s0 = inlined_call_operand.hbm [shape: f32[2,16,128], index: 0, kind: input, shape index: {}]   ;;  %s215_s1 = inlined_call_operand.hbm [shape: f32[1,16,128], index: 1, kind: input, shape index: {}]   ;;  %s216_s2 = inlined_call_operand.hbm [shape: f32[2,16,128], index: 2, kind: output, shape index: {}]  }
   0x1   :  { %8 = vsyncpa [#allocation6], 0 }
   0x2   :  { %9 = vsyncpa [#allocation4], 0  ;;  %s149_s9 = smov [#allocation2]   ;;  %s77_s13 = scalar_lea.hbm %s214_s0, 512 }
   0x3   :  { %s15_s10 = sshll.u32 %s149_s9, 4  ;;  %p78_p0 = scmp.ne.s32.totalorder %s214_s0, %s77_s13  ;;  %s16_s10 = int_to_ptr.vmem [resolvable:$true] %s15_s10 }
   0x4   :  { %p81_p1 = scmp.lt.u32.totalorder %s77_s13, %s214_s0 }
   0x6   :  { %p83_p2 = pnand %p81_p1, %p78_p0 }
   0x8   :  { %86 = shalt.err (!%p83_p2)
}
   0x9   :  { %s87_s18 = scalar_lea.vmem %s16_s10, 512  ;;  %p92_p4 = scmp.lt.s32.totalorder %s16_s10, %s16_s10 }
   0xa   :  { %p88_p3 = scmp.ne.s32.totalorder %s16_s10, %s87_s18  ;;  %p93_p5 = scmp.lt.s32.totalorder %s87_s18, %s87_s18 }
   0xc   :  { %p94_p6 = por %p93_p5, %p92_p4 }
   0xe   :  { %p95_p7 = pnand %p94_p6, %p88_p3 }
  0x10   :  { %98 = shalt.err (!%p95_p7)
}
  0x11   :  { %s150_s19 = smov 128   ;;  %s151_s20 = smov 8  }
  0x12   :  { %21 = dma.hbm_to_vmem [thread:$0]  %s214_s0, 512, %s16_s10, [#allocation3], %s150_s19, %s150_s19, %s151_s20  }
  0x13   :  { %s152_s23 = smov [#allocation5]   ;;  %s99_s27 = scalar_lea.hbm %s215_s1, 256 }
  0x14   :  { %s27_s24 = sshll.u32 %s152_s23, 4  ;;  %p100_p8 = scmp.ne.s32.totalorder %s215_s1, %s99_s27  ;;  %s28_s24 = int_to_ptr.vmem [resolvable:$true] %s27_s24 }
  0x15   :  { %p103_p9 = scmp.lt.u32.totalorder %s99_s27, %s215_s1 }
  0x17   :  { %p105_p10 = pnand %p103_p9, %p100_p8 }
  0x19   :  { %108 = shalt.err (!%p105_p10)
}
  0x1a   :  { %s109_s4 = scalar_lea.vmem %s28_s24, 256  ;;  %p114_p12 = scmp.lt.s32.totalorder %s28_s24, %s28_s24 }
  0x1b   :  { %p110_p11 = scmp.ne.s32.totalorder %s28_s24, %s109_s4  ;;  %p115_p13 = scmp.lt.s32.totalorder %s109_s4, %s109_s4 }
  0x1d   :  { %p116_p0 = por %p115_p13, %p114_p12 }
  0x1f   :  { %p117_p1 = pnand %p116_p0, %p110_p11 }
  0x21   :  { %120 = shalt.err (!%p117_p1)
}
  0x22   :  { %33 = dma.hbm_to_vmem [thread:$0]  %s215_s1, 256, %s28_s24, [#allocation6], %s150_s19, %s150_s19, %s151_s20  }
  0x23   :  { %143 = dma.done.wait [#allocation3], 512  }
  0x24   :  { %144 = vsyncadd [#allocation3], 4294966784 }
  0x25   :  { %145 = dma.done.wait [#allocation6], 256  }
  0x26   :  { %146 = vsyncadd [#allocation6], 4294967040  ;;  %s153_s6 = smov [#allocation7]   ;;  %v40_v0 = vld [vmem:[#allocation2] sm:$0xff]  ;;  %v41_v2 = vld [vmem:[#allocation2 + $0x8] sm:$0xff] }
  0x27   :  { %s59_s7 = sshll.u32 %s153_s6, 4  ;;  %v44_v1 = vld [vmem:[#allocation5] sm:$0xff]  ;;  %v45_v4 = vld [vmem:[#allocation5 + $0x8] sm:$0xff]  ;;  %v42_v5 = vld [vmem:[#allocation2 + $0x10] sm:$0xff]  ;;  %s60_s7 = int_to_ptr.vmem [resolvable:$true] %s59_s7 }
  0x28   :  { %v46_v3 = vadd.f32 %v44_v1, %v40_v0  ;;  %v43_v6 = vld [vmem:[#allocation2 + $0x18] sm:$0xff]  ;;  %v47_v7 = vadd.f32 %v45_v4, %v41_v2  ;;  %v48_v8 = vadd.f32 %v44_v1, %v42_v5  ;;  %s121_s1 = scalar_lea.vmem %s60_s7, 512  ;;  %p126_p3 = scmp.lt.s32.totalorder %s60_s7, %s60_s7 }
  0x29   :  { %v49_v9 = vadd.f32 %v45_v4, %v43_v6  ;;  %p122_p2 = scmp.ne.s32.totalorder %s60_s7, %s121_s1  ;;  %p127_p4 = scmp.lt.s32.totalorder %s121_s1, %s121_s1 }
  0x2a   :  { %50 = vst [vmem:[#allocation7] sm:$0xff] %v46_v3  ;;  %51 = vst [vmem:[#allocation7 + $0x8] sm:$0xff] %v47_v7 }
  0x2b   :  { %52 = vst [vmem:[#allocation7 + $0x10] sm:$0xff] %v48_v8  ;;  %53 = vst [vmem:[#allocation7 + $0x18] sm:$0xff] %v49_v9  ;;  %p128_p5 = por %p127_p4, %p126_p3 }
  0x2d   :  { %p129_p6 = pnand %p128_p5, %p122_p2 }
  0x2f   :  { %132 = shalt.err (!%p129_p6)
}
  0x30   :  { %s133_s10 = scalar_lea.hbm %s216_s2, 512 }
  0x31   :  { %p134_p7 = scmp.ne.s32.totalorder %s216_s2, %s133_s10  ;;  %p137_p8 = scmp.lt.u32.totalorder %s133_s10, %s216_s2 }
  0x33   :  { %p139_p9 = pnand %p137_p8, %p134_p7 }
  0x35   :  { %142 = shalt.err (!%p139_p9)
}
  0x36   :  { %65 = dma.vmem_to_hbm [thread:$0]  %s60_s7, 512, %s216_s2, [#allocation4], %s150_s19, %s150_s19, %s151_s20  }
  0x37   :  { %147 = dma.done.wait [#allocation4], 512  }
  0x38   :  { %148 = vsyncadd [#allocation4], 4294966784 }
  0x39   :  { %69 = vsyncpa [#allocation3], 1 }
  0x3a   :  { %70 = vsyncpa [#allocation6], 1 }
  0x3b   :  { %71 = vsyncpa [#allocation4], 1 }

</bundles_post_ra>
